<compile_context>
chip_gen: v5e
topology: v5e:2x2
jax: 0.10.0
libtpu: 0.0.40
codegen_flags: <defaults>
</compile_context>

<pallas_src>
import functools

import jax
import jax.numpy as jnp
from jax.experimental import pallas as pl
from jax.experimental.pallas import tpu as pltpu

_LANES = 128            # last-dim lane width of a TPU vreg
_MAX_TILE_ROWS = 512    # 512 x 128 x 4B = 256 KiB per buffer


def linear_kernel(w_ref, b_ref, x_ref, o_ref):
    # w_ref, b_ref: (1,) scalars in SMEM; x_ref/o_ref: (tile_rows, 128) VMEM tiles.
    # y = x @ W^T + b degenerates to an elementwise FMA for a 1x1 weight.
    o_ref[...] = x_ref[...] * w_ref[0] + b_ref[0]


def _round_up(a, m):
    return ((a + m - 1) // m) * m


@functools.partial(jax.jit, static_argnames=())
def my_linear(x, W, b):
    """Forward pass of MyLinear: x (N, 1) -> y (N, 1)."""
    N, in_features = x.shape
    assert in_features == 1 and W.shape == (1, 1) and b.shape == (1,)

    # --- Lane-dense re-layout: (N, 1) -> (rows_padded, 128) slab ------------
    rows = pl.cdiv(N, _LANES)
    # Tile rows: multiple of 8 (sublane), capped so one buffer stays small.
    tile_rows = min(_MAX_TILE_ROWS, _round_up(rows, 8))
    rows_padded = _round_up(rows, tile_rows)
    total_padded = rows_padded * _LANES

    x_flat = x.reshape(-1)
    x_slab = jnp.pad(x_flat, (0, total_padded - N)).reshape(rows_padded, _LANES)

    grid = (rows_padded // tile_rows,)

    w_flat = W.reshape(1)   # (1,) scalar in SMEM
    b_flat = b.reshape(1)   # (1,) scalar in SMEM

    y_slab = pl.pallas_call(
        linear_kernel,
        out_shape=jax.ShapeDtypeStruct((rows_padded, _LANES), x.dtype),
        grid=grid,
        in_specs=[
            pl.BlockSpec(memory_space=pltpu.MemorySpace.SMEM),  # W scalar
            pl.BlockSpec(memory_space=pltpu.MemorySpace.SMEM),  # b scalar
            pl.BlockSpec((tile_rows, _LANES), lambda i: (i, 0)),  # x tile
        ],
        out_specs=pl.BlockSpec((tile_rows, _LANES), lambda i: (i, 0)),
        compiler_params=pltpu.CompilerParams(
            dimension_semantics=("parallel",),
        ),
        cost_estimate=pl.CostEstimate(
            flops=2 * N,
            transcendentals=0,
            bytes_accessed=8 * N,  # read 4N + write 4N bytes (f32)
        ),
    )(w_flat, b_flat, x_slab)

    # Slice padded tail off and restore the (N, 1) PyTorch layout.
    return y_slab.reshape(-1)[:N].reshape(N, 1)


if __name__ == "__main__":
    key = jax.random.PRNGKey(0)
    kx, kw, kb = jax.random.split(key, 3)

    # Input matches the script: torch.rand(size=(500, 1)) -> uniform [0, 1).
    N = 500
    x = jax.random.uniform(kx, (N, 1), dtype=jnp.float32)

    # Deterministic parameter init mimicking nn.Linear(1, 1):
    # uniform(-1/sqrt(in_features), 1/sqrt(in_features)) with in_features = 1.
    bound = 1.0
    W = jax.random.uniform(kw, (1, 1), dtype=jnp.float32, minval=-bound, maxval=bound)
    b = jax.random.uniform(kb, (1,), dtype=jnp.float32, minval=-bound, maxval=bound)

    y = my_linear(x, W, b)
    jax.block_until_ready(y)

    # Pure-JAX reference for correctness.
    y_ref = x @ W.T + b
    assert y.shape == (N, 1)
    assert jnp.allclose(y, y_ref, atol=1e-6), "mismatch vs reference"

    print("KERNEL_OK")
</pallas_src>

<mosaic_0001>
module attributes {stable_mosaic.version = 11 : i64} {
  func.func @linear_kernel(%arg0: i32, %arg1: memref<1xf32, #tpu.memory_space<smem>>, %arg2: memref<1xf32, #tpu.memory_space<smem>>, %arg3: memref<8x128xf32, #tpu.memory_space<vmem>>, %arg4: memref<8x128xf32, #tpu.memory_space<vmem>>) attributes {dimension_semantics = [#tpu.dimension_semantics<parallel>], iteration_bounds = array<i64: 1>, scalar_prefetch = 0 : i64, scratch_operands = 0 : i64, tpu.core_type = #tpu.core_type<tc>, window_params = [{transform_indices = @transform_0, window_bounds = array<i64: 1>}, {transform_indices = @transform_1, window_bounds = array<i64: 1>}, {transform_indices = @transform_2, window_bounds = array<i64: 8, 128>}, {transform_indices = @transform_3, window_bounds = array<i64: 8, 128>}]} {
    %c0 = arith.constant 0 : index
    %c0_0 = arith.constant 0 : index
    %0 = vector.load %arg3[%c0, %c0_0] : memref<8x128xf32, #tpu.memory_space<vmem>>, vector<8x128xf32>
    %c0_1 = arith.constant 0 : index
    %1 = memref.load %arg1[%c0_1] : memref<1xf32, #tpu.memory_space<smem>>
    %2 = vector.broadcast %1 : f32 to vector<8x128xf32>
    %3 = arith.mulf %0, %2 : vector<8x128xf32>
    %c0_2 = arith.constant 0 : index
    %4 = memref.load %arg2[%c0_2] : memref<1xf32, #tpu.memory_space<smem>>
    %5 = vector.broadcast %4 : f32 to vector<8x128xf32>
    %6 = arith.addf %3, %5 : vector<8x128xf32>
    %c0_3 = arith.constant 0 : index
    %c0_4 = arith.constant 0 : index
    %7 = vector.load %arg4[%c0_3, %c0_4] : memref<8x128xf32, #tpu.memory_space<vmem>>, vector<8x128xf32>
    tpu.vector_store %arg4[%c0_3, %c0_4], %6 {strides = array<i32>} : memref<8x128xf32, #tpu.memory_space<vmem>>, vector<8x128xf32>,
    return
  }
  func.func @transform_0(%arg0: i32) -> i32 {
    %c0_i32 = arith.constant 0 : i32
    %c0_i32_0 = arith.constant 0 : i32
    return %c0_i32 : i32
  }
  func.func @transform_1(%arg0: i32) -> i32 {
    %c0_i32 = arith.constant 0 : i32
    %c0_i32_0 = arith.constant 0 : i32
    return %c0_i32 : i32
  }
  func.func @transform_2(%arg0: i32) -> (i32, i32) {
    %c0_i32 = arith.constant 0 : i32
    %c0_i32_0 = arith.constant 0 : i32
    return %arg0, %c0_i32 : i32, i32
  }
  func.func @transform_3(%arg0: i32) -> (i32, i32) {
    %c0_i32 = arith.constant 0 : i32
    %c0_i32_0 = arith.constant 0 : i32
    return %arg0, %c0_i32 : i32, i32
  }
}

</mosaic_0001>

<bundles_post_ra>
// kernel: my_linear.1
= control target key start
LH: loop header
LB: loop body
LE: loop exit
PB: predicated region body
PF: predicated region fallthrough
CT: control target
= control target key end

     0   :  { %s60_s0 = inlined_call_operand.<no memory space> [shape: f32[1], index: 0, kind: input, shape index: {}]   ;;  %s61_s1 = inlined_call_operand.<no memory space> [shape: f32[1], index: 1, kind: input, shape index: {}]   ;;  %s62_s2 = inlined_call_operand.vmem [shape: f32[8,128], index: 2, kind: input, shape index: {}]   ;;  %s63_s3 = inlined_call_operand.vmem [shape: f32[8,128], index: 3, kind: output, shape index: {}]  }
   0x1   :  { %v16_v0 = vld [vmem:[%s62_s2] sm:$0xff]  ;;  %v18_v1 = vstv %s60_s0  ;;  %v21_v2 = vstv %s61_s1 }
   0x2   :  { %v19_v3 = vmul.f32 %v18_v1, %v16_v0 }
   0x4   :  { %v22_v4 = vadd.f32 %v21_v2, %v19_v3 }
   0x6   :  { %23 = vst [vmem:[%s63_s3] sm:$0xff] %v22_v4 }

</bundles_post_ra>
